<compile_context>
chip_gen: v7x
topology: tpu7x:2x2x1
jax: 0.10.0
libtpu: 0.0.40
codegen_flags: <defaults>
</compile_context>

<pallas_src>
import functools

import jax
import jax.numpy as jnp
from jax.experimental import pallas as pl
from jax.experimental.pallas import tpu as pltpu


def _round_up(n, m):
    return ((n + m - 1) // m) * m


def _lr_kernel(x_ref, w_ref, b_ref, out_ref):
    """One batch tile: MXU matmul + bias add + sigmoid, packed (probas|logits) store."""
    o = w_ref.shape[1]
    x = x_ref[...]
    w = w_ref[...]
    b = b_ref[...].astype(jnp.float32)
    logits = jnp.dot(x, w, preferred_element_type=jnp.float32) + b   # (TB, O) f32
    probas = jax.nn.sigmoid(logits)                                  # EUP, f32
    packed = jnp.concatenate([probas, logits], axis=-1)              # (TB, 2*O)
    del o
    out_ref[...] = packed.astype(out_ref.dtype)


@functools.partial(jax.jit, static_argnames=("block_b", "use_pallas"))
def lr_forward(x, w_t, b, *, block_b=512, use_pallas=None):
    """Forward pass of LR_PyTorch_old.

    Args:
      x:   (B, D) input batch (f32; bf16 also works — dot accumulates in f32).
      w_t: (D, O) weight, already transposed from PyTorch's (O, D).
      b:   (1, O) bias.
      block_b: batch tile size (rows per grid step).
      use_pallas: None = auto (Pallas only when B is large enough to amortize the
        launch overhead), True/False to force.
    Returns:
      (probas, logits), each (B, O) float32.
    """
    B, D = x.shape
    O = w_t.shape[1]

    if use_pallas is None:
        use_pallas = B >= 128
    if not use_pallas:
        # Tiny batch: fused XLA dot + sigmoid beats a custom call's fixed overhead.
        logits = jnp.dot(x, w_t, preferred_element_type=jnp.float32) + b
        return jax.nn.sigmoid(logits), logits

    # Tile the batch; pad B up to a multiple of the tile so every block is full.
    TB = min(block_b, _round_up(B, 8))
    Bp = _round_up(B, TB)
    if Bp != B:
        x = jnp.pad(x, ((0, Bp - B), (0, 0)))
    num_blocks = Bp // TB

    # VMEM budget: double-buffered x blocks + packed output blocks + resident W/bias
    # (rounded to (8,128) tile padding), with 2x headroom, clamped to fit v7x (64 MiB
    # physical) comfortably.
    vmem_bytes = (
        2 * TB * _round_up(D, 128) * 4                     # x blocks (double-buffered)
        + 2 * TB * _round_up(2 * O, 128) * 4               # packed output blocks
        + 2 * _round_up(D, 8) * _round_up(O, 128) * 4      # weight (resident)
        + 2 * 8 * 128 * 4                                  # bias tile
    )
    vmem_limit = int(min(max(2 * vmem_bytes, 4 * 1024 * 1024), 32 * 1024 * 1024))

    packed = pl.pallas_call(
        _lr_kernel,
        out_shape=jax.ShapeDtypeStruct((Bp, 2 * O), jnp.float32),
        grid_spec=pltpu.PrefetchScalarGridSpec(
            num_scalar_prefetch=0,
            grid=(num_blocks,),
            in_specs=[
                pl.BlockSpec((TB, D), lambda i: (i, 0)),   # x: streamed over batch
                pl.BlockSpec((D, O), lambda i: (0, 0)),    # W: resident across steps
                pl.BlockSpec((1, O), lambda i: (0, 0)),    # bias: resident
            ],
            out_specs=pl.BlockSpec((TB, 2 * O), lambda i: (i, 0)),
        ),
        compiler_params=pltpu.CompilerParams(
            dimension_semantics=("parallel",),             # shard batch over v7x's 2 TCs
            vmem_limit_bytes=vmem_limit,
        ),
    )(x, w_t, b)

    packed = packed[:B]
    probas = packed[:, :O]
    logits = packed[:, O:]
    return probas, logits


def init_lr_params(input_dim, output_dim, seed=42):
    """Deterministic parameter init mirroring the module's __init__ shape logic.

    If output_dim == 2 it collapses to 1 (binary classification with a single
    sigmoid output), exactly as in LR_PyTorch_old.
    """
    if output_dim == 2:
        output_dim = 1
    key = jax.random.PRNGKey(seed)
    kw, kb = jax.random.split(key)
    # PyTorch nn.Linear default init: U(-1/sqrt(in), 1/sqrt(in)).
    bound = 1.0 / jnp.sqrt(jnp.float32(input_dim))
    w = jax.random.uniform(kw, (output_dim, input_dim), jnp.float32, -bound, bound)
    b = jax.random.uniform(kb, (output_dim,), jnp.float32, -bound, bound)
    # Pre-transpose weight to (D, O); bias to (1, O) for broadcasting in-kernel.
    return w.T, b.reshape(1, output_dim)


if __name__ == "__main__":
    input_dim = 32
    output_dim = 2  # collapses to 1 output unit, like the PyTorch module

    w_t, b = init_lr_params(input_dim, output_dim, seed=42)
    key = jax.random.PRNGKey(0)

    # Case 1: batch large enough to exercise the tiled Pallas path (grid of 4 steps).
    batch = 512
    x = jax.random.normal(key, (batch, input_dim), jnp.float32)
    probas, logits = lr_forward(x, w_t, b, block_b=128, use_pallas=True)
    jax.block_until_ready((probas, logits))

    logits_ref = x @ w_t + b
    probas_ref = jax.nn.sigmoid(logits_ref)
    assert probas.shape == (batch, 1) and logits.shape == (batch, 1)
    assert jnp.allclose(logits, logits_ref, atol=1e-5, rtol=1e-5)
    assert jnp.allclose(probas, probas_ref, atol=1e-5, rtol=1e-5)

    # Case 2: batch NOT divisible by the tile size (wrapper pads and slices back).
    x2 = x[:300]
    probas2, logits2 = lr_forward(x2, w_t, b, block_b=128, use_pallas=True)
    jax.block_until_ready((probas2, logits2))
    assert probas2.shape == (300, 1) and logits2.shape == (300, 1)
    assert jnp.allclose(logits2, logits_ref[:300], atol=1e-5, rtol=1e-5)
    assert jnp.allclose(probas2, probas_ref[:300], atol=1e-5, rtol=1e-5)

    # Case 3: tiny batch takes the XLA fallback (Pallas launch overhead not worth it).
    x3 = x[:8]
    probas3, logits3 = lr_forward(x3, w_t, b)
    jax.block_until_ready((probas3, logits3))
    assert jnp.allclose(logits3, logits_ref[:8], atol=1e-5, rtol=1e-5)
    assert jnp.allclose(probas3, probas_ref[:8], atol=1e-5, rtol=1e-5)

    # TODO(synk): optional bf16 input reads (2x HBM-read roofline) left off to keep
    # numerics identical to the fp32 PyTorch module.
    print("KERNEL_OK")
</pallas_src>

<mosaic_0001>
module attributes {stable_mosaic.version = 11 : i64} {
  func.func @_lr_kernel(%arg0: i32, %arg1: memref<128x32xf32, #tpu.memory_space<vmem>>, %arg2: memref<32x1xf32, #tpu.memory_space<vmem>>, %arg3: memref<1x1xf32, #tpu.memory_space<vmem>>, %arg4: memref<128x2xf32, #tpu.memory_space<vmem>>) attributes {dimension_semantics = [#tpu.dimension_semantics<parallel>], iteration_bounds = array<i64: 4>, scalar_prefetch = 0 : i64, scratch_operands = 0 : i64, tpu.core_type = #tpu.core_type<tc>, window_params = [{transform_indices = @transform_0, window_bounds = array<i64: 128, 32>}, {pipeline_mode = #tpu.pipeline_mode<synchronous>, transform_indices = @transform_1, window_bounds = array<i64: 32, 1>}, {pipeline_mode = #tpu.pipeline_mode<synchronous>, transform_indices = @transform_2, window_bounds = array<i64: 1, 1>}, {transform_indices = @transform_3, window_bounds = array<i64: 128, 2>}]} {
    %c0 = arith.constant 0 : index
    %c0_0 = arith.constant 0 : index
    %0 = vector.load %arg1[%c0, %c0_0] : memref<128x32xf32, #tpu.memory_space<vmem>>, vector<128x32xf32>
    %c0_1 = arith.constant 0 : index
    %c0_2 = arith.constant 0 : index
    %1 = vector.load %arg2[%c0_1, %c0_2] : memref<32x1xf32, #tpu.memory_space<vmem>>, vector<32x1xf32>
    %c0_3 = arith.constant 0 : index
    %c0_4 = arith.constant 0 : index
    %2 = vector.load %arg3[%c0_3, %c0_4] : memref<1x1xf32, #tpu.memory_space<vmem>>, vector<1x1xf32>
    %cst = arith.constant dense<0.000000e+00> : vector<128x1xf32>
    %3 = tpu.matmul %0, %1, %cst {dimension_numbers = #tpu.dot_dimension_numbers<[1], [0], [0], [1], [0, 0, 1, 1], [], []>} : vector<128x32xf32>, vector<32x1xf32>, vector<128x1xf32> -> vector<128x1xf32>
    %4 = vector.broadcast %2 : vector<1x1xf32> to vector<128x1xf32>
    %5 = arith.addf %3, %4 : vector<128x1xf32>
    %6 = arith.negf %5 : vector<128x1xf32>
    %7 = math.exp %6 : vector<128x1xf32>
    %cst_5 = arith.constant 1.000000e+00 : f32
    %8 = vector.broadcast %cst_5 : f32 to vector<128x1xf32>
    %9 = arith.addf %8, %7 : vector<128x1xf32>
    %10 = arith.divf %8, %9 : vector<128x1xf32>
    %11 = tpu.concatenate %10, %5 in 1 : vector<128x1xf32>, vector<128x1xf32> -> vector<128x2xf32>
    %c0_6 = arith.constant 0 : index
    %c0_7 = arith.constant 0 : index
    %12 = vector.load %arg4[%c0_6, %c0_7] : memref<128x2xf32, #tpu.memory_space<vmem>>, vector<128x2xf32>
    tpu.vector_store %arg4[%c0_6, %c0_7], %11 {strides = array<i32>} : memref<128x2xf32, #tpu.memory_space<vmem>>, vector<128x2xf32>,
    return
  }
  func.func @transform_0(%arg0: i32) -> (i32, i32) {
    %c0_i32 = arith.constant 0 : i32
    %c0_i32_0 = arith.constant 0 : i32
    return %arg0, %c0_i32 : i32, i32
  }
  func.func @transform_1(%arg0: i32) -> (i32, i32) {
    %c0_i32 = arith.constant 0 : i32
    %c0_i32_0 = arith.constant 0 : i32
    %c0_i32_1 = arith.constant 0 : i32
    return %c0_i32, %c0_i32_0 : i32, i32
  }
  func.func @transform_2(%arg0: i32) -> (i32, i32) {
    %c0_i32 = arith.constant 0 : i32
    %c0_i32_0 = arith.constant 0 : i32
    %c0_i32_1 = arith.constant 0 : i32
    return %c0_i32, %c0_i32_0 : i32, i32
  }
  func.func @transform_3(%arg0: i32) -> (i32, i32) {
    %c0_i32 = arith.constant 0 : i32
    %c0_i32_0 = arith.constant 0 : i32
    return %arg0, %c0_i32 : i32, i32
  }
}

</mosaic_0001>

<bundles_post_ra>
// kernel: lr_forward.1
= control target key start
LH: loop header
LB: loop body
LE: loop exit
PB: predicated region body
PF: predicated region fallthrough
CT: control target
= control target key end

     0   :  { %s860_s14 = smov 0   ;;  %s996_s0 = inlined_call_operand.vmem [shape: f32[512,32], index: 0, kind: input, shape index: {}]   ;;  %s997_s1 = inlined_call_operand.vmem [shape: f32[32,1], index: 1, kind: input, shape index: {}]   ;;  %s998_s2 = inlined_call_operand.<no memory space> [shape: f32[1,1], index: 2, kind: input, shape index: {}]   ;;  %s999_s3 = inlined_call_operand.vmem [shape: f32[512,2], index: 3, kind: output, shape index: {}]  }
   0x1   :  { %v8_v0 = vstv %s998_s2 }
   0x2   :  { %9 = vst [vmem:[#allocation2] sm:$0x1] %v8_v0 }
   0x3 LB: > { %s647_s15 = sadd.s32 4294967295, %s834_s14   ;;  %p651_p0 = scmp.ge.s32.totalorder %s834_s14, 1  ;;  %s834_s14 = sphi %s860_s14, %s15_s14  }
   0x4   : > { %p140_p1 = scmp.lt.s32.totalorder %s834_s14, 5 }
   0x6   : > { %p141_p2 = pnand %p651_p0, %p140_p1 }
   0x7   : > { %v192_v1 = vld [vmem:[%s997_s1] sm:$0xff] (!%p141_p2)  ;;  %v193_v2 = vld [vmem:[%s997_s1 + $0x8] sm:$0xff] (!%p141_p2)  ;;  %v194_v3 = vld [vmem:[%s997_s1 + $0x10] sm:$0xff] (!%p141_p2)  ;;  %s652_s21 = sshll.u32 (!%p141_p2), %s647_s15, 4  ;;  %vm203_vm0 = vcmask (!%p141_p2), 261120   ;;  %s836_s28 = smov (!%p141_p2), 1  }
   0x8   : > { %144 = sbr.rel (%p141_p2) target bundleno = 380 (0x17c), region = 32  ;;  %v743_v4 = vpack.c.bf16 (!%p141_p2), %v193_v2, %v192_v1  ;;  %v195_v5 = vld [vmem:[%s997_s1 + $0x18] sm:$0xff] (!%p141_p2)  ;;  %p165_p3 = scmp.lt.s32.totalorder (!%p141_p2), %s652_s21, 63  ;;  %vm557_vm1 = vcmask (!%p141_p2), 7168   ;;  %vm574_vm2 = vcmask (!%p141_p2), 15360  }
   0x9   : > { %v747_v6 = vpack.c.bf16 (!%p141_p2), %v195_v5, %v194_v3  ;;  %v656_v23 = vld [vmem:[#allocation2] ss:$0 sm:$0xff] (!%p141_p2) }
   0xa   : > { %744 = vmatprep.subr.bf16.mxu0 (!%p141_p2), %v743_v4  ;;  %751 = vmatprep.subr.bf16.mxu1 (!%p141_p2), %v743_v4 }
   0xb   : > { %746 = vmatpush3.bf16.msra.mxu0 (!%p141_p2), %v743_v4  ;;  %753 = vmatpush3.bf16.msra.mxu1 (!%p141_p2), %v743_v4 }
   0xc   : > { %748 = vmatprep.subr.bf16.mxu0 (!%p141_p2), %v747_v6  ;;  %752 = vmatprep.subr.bf16.mxu1 (!%p141_p2), %v747_v6 }
   0xf   : > { %s1001_s21 = smov (!%p165_p3, %s652_s21), 63  ;;  %750 = vmatpush3.bf16.msra.mxu0 %v747_v6  ;;  %754 = vmatpush3.bf16.msra.mxu1 %v747_v6 }
  0x10   : > { %s653_s24 = sshll.u32 %s1001_s21, 3 }
  0x11   : > { %s888_s27 = scalar_lea.vmem %s996_s0, %s653_s24  ;;  %s943_s4 = scalar_lea.vmem %s999_s3, %s653_s24 }
  0x12   : > { %v176_v7 = vld [vmem:[%s888_s27] sm:$0xff]  ;;  %v177_v9 = vld [vmem:[%s888_s27 + $0x8] sm:$0xff]  ;;  %v178_v11 = vld [vmem:[%s888_s27 + $0x10] sm:$0xff] }
  0x13   : > { %v184_v8 = vld [vmem:[%s888_s27 + $0x40] sm:$0xff]  ;;  %v185_v10 = vld [vmem:[%s888_s27 + $0x48] sm:$0xff]  ;;  %719 = vmatprep.mubr.msk.f32.mxu0 %vm203_vm0, %v176_v7  ;;  %v186_v12 = vld [vmem:[%s888_s27 + $0x50] sm:$0xff] }
  0x14   : > { %731 = vmatprep.mubr.msk.f32.mxu1 %vm203_vm0, %v184_v8  ;;  %720 = vmatmul.mubr.msk.f32.vlgmr.msra.gmra.mrb[0].mxu0 %vm203_vm0, %v177_v9  ;;  %v179_v13 = vld [vmem:[%s888_s27 + $0x18] sm:$0xff]  ;;  %v180_v15 = vld [vmem:[%s888_s27 + $0x20] sm:$0xff]  ;;  %v181_v17 = vld [vmem:[%s888_s27 + $0x28] sm:$0xff] }
  0x15   : > { %732 = vmatmul.mubr.msk.f32.vlgmr.msra.gmra.mrb[0].mxu1 %vm203_vm0, %v185_v10  ;;  %722 = vmatprep.mubr.msk.f32.mxu0 %vm203_vm0, %v178_v11  ;;  %v187_v14 = vld [vmem:[%s888_s27 + $0x58] sm:$0xff]  ;;  %v188_v16 = vld [vmem:[%s888_s27 + $0x60] sm:$0xff]  ;;  %v189_v18 = vld [vmem:[%s888_s27 + $0x68] sm:$0xff] }
  0x16   : > { %734 = vmatprep.mubr.msk.f32.mxu1 %vm203_vm0, %v186_v12  ;;  %v182_v19 = vld [vmem:[%s888_s27 + $0x30] sm:$0xff]  ;;  %v183_v21 = vld [vmem:[%s888_s27 + $0x38] sm:$0xff] }
  0x17   : > { %v190_v20 = vld [vmem:[%s888_s27 + $0x70] sm:$0xff]  ;;  %v191_v22 = vld [vmem:[%s888_s27 + $0x78] sm:$0xff] }
  0x18   : > { %723 = vmatmul.mubr.msk.f32.gmra.mrb[2].mxu0 %vm203_vm0, %v179_v13 }
  0x19   : > { %735 = vmatmul.mubr.msk.f32.gmra.mrb[2].mxu1 %vm203_vm0, %v187_v14  ;;  %725 = vmatprep.mubr.msk.f32.mxu0 %vm203_vm0, %v180_v15 }
  0x1a   : > { %737 = vmatprep.mubr.msk.f32.mxu1 %vm203_vm0, %v188_v16 }
  0x1c   : > { %726 = vmatmul.mubr.msk.f32.gmra.mrb[4].mxu0 %vm203_vm0, %v181_v17 }
  0x1d   : > { %738 = vmatmul.mubr.msk.f32.gmra.mrb[4].mxu1 %vm203_vm0, %v189_v18  ;;  %728 = vmatprep.mubr.msk.f32.mxu0 %vm203_vm0, %v182_v19 }
  0x1e   : > { %740 = vmatprep.mubr.msk.f32.mxu1 %vm203_vm0, %v190_v20 }
  0x20   : > { %729 = vmatmul.mubr.msk.f32.gmra.mrb[6].mxu0 %vm203_vm0, %v183_v21 }
  0x21   : > { %741 = vmatmul.mubr.msk.f32.gmra.mrb[6].mxu1 %vm203_vm0, %v191_v22 }
  0xe7   : > { %v721_v24 = vpop.f32.mrb[0].mxu0 }
  0xe8   : > { %v733_v25 = vpop.f32.mrb[0].mxu1  ;;  %v324_v26 = vadd.f32 %v721_v24, %v656_v23  ;;  %v318_v28 = vpop.f32.mrb[1].mxu0 }
  0xe9   : > { %v364_v27 = vadd.f32 %v733_v25, %v656_v23  ;;  %v358_v29 = vpop.f32.mrb[1].mxu1  ;;  %v319_v32 = vadd.f32 %v656_v23, %v318_v28 }
  0xea   : > { %511 = vrot.lane.b32.xlu0 %v324_v26, %s836_s28  ;;  %v359_v39 = vadd.f32 %v656_v23, %v358_v29  ;;  %v674_v56 = vmul.f32 -1.442695, %v324_v26 }
  0xeb   : > { %527 = vrot.lane.b32.xlu1 %v364_v27, %s836_s28  ;;  %v724_v30 = vpop.f32.mrb[2].mxu0  ;;  %v682_v57 = vmul.f32 -1.442695, %v364_v27  ;;  %v673_v58 = vmul.f32 -1.442695, %v319_v32 }
  0xec   : > { %v736_v31 = vpop.f32.mrb[2].mxu1  ;;  %v334_v33 = vadd.f32 %v724_v30, %v656_v23  ;;  %v328_v34 = vpop.f32.mrb[3].mxu0  ;;  %764 = vpow2.f32 %v674_v56  ;;  %v681_v60 = vmul.f32 -1.442695, %v359_v39 }
  0xed   : > { %v368_v35 = vpop.f32.mrb[3].mxu1  ;;  %v374_v36 = vadd.f32 %v736_v31, %v656_v23  ;;  %v329_v44 = vadd.f32 %v656_v23, %v328_v34  ;;  %766 = vpow2.f32 %v682_v57 }
  0xee   : > { %509 = vrot.lane.b32.xlu0 %v319_v32, %s836_s28  ;;  %v369_v45 = vadd.f32 %v656_v23, %v368_v35  ;;  %v676_v59 = vmul.f32 -1.442695, %v334_v33  ;;  %768 = vpow2.f32 %v673_v58 }
  0xef   : > { %515 = vrot.lane.b32.xlu1 %v334_v33, %s836_s28  ;;  %v727_v37 = vpop.f32.mrb[4].mxu0  ;;  %v684_v61 = vmul.f32 -1.442695, %v374_v36  ;;  %v675_v62 = vmul.f32 -1.442695, %v329_v44 }
  0xf0   : > { %v739_v38 = vpop.f32.mrb[4].mxu1  ;;  %v338_v40 = vpop.f32.mrb[5].mxu0  ;;  %v344_v48 = vadd.f32 %v727_v37, %v656_v23  ;;  %770 = vpow2.f32 %v676_v59  ;;  %v683_v63 = vmul.f32 -1.442695, %v369_v45 }
  0xf1   : > { %v378_v41 = vpop.f32.mrb[5].mxu1  ;;  %v339_v49 = vadd.f32 %v656_v23, %v338_v40  ;;  %v384_v50 = vadd.f32 %v739_v38, %v656_v23  ;;  %772 = vpow2.f32 %v681_v60 }
  0xf2   : > { %525 = vrot.lane.b32.xlu0 %v359_v39, %s836_s28  ;;  %v379_v51 = vadd.f32 %v656_v23, %v378_v41  ;;  %774 = vpow2.f32 %v684_v61  ;;  %v678_v2 = vmul.f32 -1.442695, %v344_v48 }
  0xf3   : > { %531 = vrot.lane.b32.xlu1 %v374_v36, %s836_s28  ;;  %v730_v42 = vpop.f32.mrb[6].mxu0  ;;  %776 = vpow2.f32 %v675_v62  ;;  %v677_v3 = vmul.f32 -1.442695, %v339_v49  ;;  %v686_v8 = vmul.f32 -1.442695, %v384_v50 }
  0xf4   : > { %v742_v43 = vpop.f32.mrb[6].mxu1  ;;  %v348_v46 = vpop.f32.mrb[7].mxu0  ;;  %v354_v52 = vadd.f32 %v730_v42, %v656_v23  ;;  %778 = vpow2.f32 %v683_v63  ;;  %v685_v9 = vmul.f32 -1.442695, %v379_v51 }
  0xf5   : > { %v388_v47 = vpop.f32.mrb[7].mxu1  ;;  %v349_v53 = vadd.f32 %v656_v23, %v348_v46  ;;  %v394_v54 = vadd.f32 %v742_v43, %v656_v23  ;;  %780 = vpow2.f32 %v678_v2 }
  0xf6   : > { %529 = vrot.lane.b32.xlu0 %v369_v45, %s836_s28  ;;  %v389_v55 = vadd.f32 %v656_v23, %v388_v47  ;;  %v765_v0 = vpop.eup %764  ;;  %782 = vpow2.f32 %v677_v3  ;;  %v680_v14 = vmul.f32 -1.442695, %v354_v52 }
  0xf7   : > { %513 = vrot.lane.b32.xlu1 %v329_v44, %s836_s28  ;;  %v767_v1 = vpop.eup %766  ;;  %v446_v4 = vadd.f32 1.0, %v765_v0  ;;  %v679_v17 = vmul.f32 -1.442695, %v349_v53  ;;  %v688_v21 = vmul.f32 -1.442695, %v394_v54 }
  0xf8   : > { %v769_v5 = vpop.eup %768  ;;  %v454_v6 = vadd.f32 1.0, %v767_v1  ;;  %v687_v23 = vmul.f32 -1.442695, %v389_v55 }
  0xf9   : > { %784 = vrcp.f32 %v446_v4  ;;  %v445_v11 = vadd.f32 1.0, %v769_v5 }
  0xfa   : > { %517 = vrot.lane.b32.xlu0 %v339_v49, %s836_s28  ;;  %v771_v7 = vpop.eup %770  ;;  %786 = vrcp.f32 %v454_v6 }
  0xfb   : > { %519 = vrot.lane.b32.xlu1 %v344_v48, %s836_s28  ;;  %v773_v10 = vpop.eup %772  ;;  %v448_v12 = vadd.f32 1.0, %v771_v7  ;;  %788 = vpow2.f32 %v686_v8 }
  0xfc   : > { %v775_v13 = vpop.eup %774  ;;  %v453_v16 = vadd.f32 1.0, %v773_v10  ;;  %790 = vpow2.f32 %v685_v9 }
  0xfd   : > { %v777_v15 = vpop.eup %776  ;;  %792 = vrcp.f32 %v445_v11  ;;  %v456_v18 = vadd.f32 1.0, %v775_v13 }
  0xfe   : > { %533 = vrot.lane.b32.xlu0 %v379_v51, %s836_s28  ;;  %794 = vrcp.f32 %v448_v12  ;;  %v779_v19 = vpop.eup %778  ;;  %v447_v20 = vadd.f32 1.0, %v777_v15 }
  0xff   : > { %535 = vrot.lane.b32.xlu1 %v384_v50, %s836_s28  ;;  %796 = vpow2.f32 %v680_v14  ;;  %v781_v22 = vpop.eup %780  ;;  %v455_v25 = vadd.f32 1.0, %v779_v19 }
 0x100   : > { %798 = vrcp.f32 %v453_v16  ;;  %v783_v24 = vpop.eup %782  ;;  %v450_v31 = vadd.f32 1.0, %v781_v22 }
 0x101   : > { %800 = vpow2.f32 %v679_v17  ;;  %v449_v35 = vadd.f32 1.0, %v783_v24 }
 0x102   : > { %521 = vrot.lane.b32.xlu0 %v349_v53, %s836_s28  ;;  %802 = vrcp.f32 %v456_v18 }
 0x103   : > { %523 = vrot.lane.b32.xlu1 %v354_v52, %s836_s28  ;;  %v785_v26 = vpop.eup %784  ;;  %804 = vrcp.f32 %v447_v20 }
 0x104   : > { %v787_v27 = vpop.eup %786  ;;  %806 = vpow2.f32 %v688_v21 }
 0x105   : > { %v789_v30 = vpop.eup %788  ;;  %808 = vpow2.f32 %v687_v23 }
 0x106   : > { %537 = vrot.lane.b32.xlu0 %v389_v55, %s836_s28  ;;  %v791_v34 = vpop.eup %790  ;;  %810 = vrcp.f32 %v455_v25  ;;  %v458_v41 = vadd.f32 1.0, %v789_v30 }
 0x107   : > { %539 = vrot.lane.b32.xlu1 %v394_v54, %s836_s28  ;;  %v793_v36 = vpop.eup %792  ;;  %812 = vrcp.f32 %v450_v31  ;;  %v457_v45 = vadd.f32 1.0, %v791_v34 }
 0x108   : > { %v795_v37 = vpop.eup %794  ;;  %814 = vrcp.f32 %v449_v35 }
 0x109   : > { %v797_v40 = vpop.eup %796  ;;  %816 = vrcp.f32 %v458_v41 }
 0x10a   : > { %v799_v44 = vpop.eup %798  ;;  %v452_v51 = vadd.f32 1.0, %v797_v40  ;;  %818 = vrcp.f32 %v457_v45 }
 0x10b   : > { %v801_v46 = vpop.eup %800 }
 0x10c   : > { %v803_v47 = vpop.eup %802  ;;  %v451_v55 = vadd.f32 1.0, %v801_v46  ;;  %820 = vrcp.f32 %v452_v51 }
 0x10d   : > { %v805_v50 = vpop.eup %804 }
 0x10e   : > { %v807_v54 = vpop.eup %806  ;;  %822 = vrcp.f32 %v451_v55 }
 0x10f   : > { %v809_v56 = vpop.eup %808  ;;  %v460_v60 = vadd.f32 1.0, %v807_v54 }
 0x110   : > { %v811_v57 = vpop.eup %810  ;;  %v459_v63 = vadd.f32 1.0, %v809_v56 }
 0x111   : > { %v813_v0 = vpop.eup %812  ;;  %824 = vrcp.f32 %v460_v60 }
 0x112   : > { %v815_v1 = vpop.eup %814  ;;  %826 = vrcp.f32 %v459_v63 }
 0x113   : > { %v817_v6 = vpop.eup %816 }
 0x114   : > { %v819_v7 = vpop.eup %818 }
 0x116   : > { %v821_v12 = vpop.eup %820 }
 0x118   : > { %v823_v13 = vpop.eup %822 }
 0x11b   : > { %v825_v18 = vpop.eup %824 }
 0x11c   : > { %v827_v19 = vpop.eup %826 }
 0x15c   : > { %v512_v29 = vpop.permute.xlu0 %511 }
 0x15d   : > { %v528_v28 = vpop.permute.xlu1 %527  ;;  %v559_v33 = vsel %vm557_vm1, %v785_v26, %v512_v29 }
 0x15e   : > { %v567_v32 = vsel %vm557_vm1, %v787_v27, %v528_v28  ;;  %576 = vst.msk [vmem:[%s943_s4 + $0x8] sm:$0xff] %vm574_vm2, %v559_v33 }
 0x15f   : > { %584 = vst.msk [vmem:[%s943_s4 + $0x48] sm:$0xff] %vm574_vm2, %v567_v32 }
 0x160   : > { %v510_v39 = vpop.permute.xlu0 %509 }
 0x161   : > { %v516_v38 = vpop.permute.xlu1 %515  ;;  %v558_v43 = vsel %vm557_vm1, %v793_v36, %v510_v39 }
 0x162   : > { %v561_v42 = vsel %vm557_vm1, %v795_v37, %v516_v38  ;;  %575 = vst.msk [vmem:[%s943_s4] sm:$0xff] %vm574_vm2, %v558_v43 }
 0x163   : > { %578 = vst.msk [vmem:[%s943_s4 + $0x18] sm:$0xff] %vm574_vm2, %v561_v42 }
 0x164   : > { %v526_v49 = vpop.permute.xlu0 %525 }
 0x165   : > { %v532_v48 = vpop.permute.xlu1 %531  ;;  %v566_v53 = vsel %vm557_vm1, %v799_v44, %v526_v49 }
 0x166   : > { %v569_v52 = vsel %vm557_vm1, %v803_v47, %v532_v48  ;;  %583 = vst.msk [vmem:[%s943_s4 + $0x40] sm:$0xff] %vm574_vm2, %v566_v53 }
 0x167   : > { %586 = vst.msk [vmem:[%s943_s4 + $0x58] sm:$0xff] %vm574_vm2, %v569_v52 }
 0x168   : > { %v530_v59 = vpop.permute.xlu0 %529 }
 0x169   : > { %v514_v58 = vpop.permute.xlu1 %513  ;;  %v568_v62 = vsel %vm557_vm1, %v811_v57, %v530_v59 }
 0x16a   : > { %v560_v61 = vsel %vm557_vm1, %v805_v50, %v514_v58  ;;  %585 = vst.msk [vmem:[%s943_s4 + $0x50] sm:$0xff] %vm574_vm2, %v568_v62 }
 0x16b   : > { %577 = vst.msk [vmem:[%s943_s4 + $0x10] sm:$0xff] %vm574_vm2, %v560_v61 }
 0x16c   : > { %v518_v3 = vpop.permute.xlu0 %517 }
 0x16d   : > { %v520_v2 = vpop.permute.xlu1 %519  ;;  %v562_v5 = vsel %vm557_vm1, %v815_v1, %v518_v3 }
 0x16e   : > { %v563_v4 = vsel %vm557_vm1, %v813_v0, %v520_v2  ;;  %579 = vst.msk [vmem:[%s943_s4 + $0x20] sm:$0xff] %vm574_vm2, %v562_v5 }
 0x16f   : > { %580 = vst.msk [vmem:[%s943_s4 + $0x28] sm:$0xff] %vm574_vm2, %v563_v4 }
 0x170   : > { %v534_v9 = vpop.permute.xlu0 %533 }
 0x171   : > { %v536_v8 = vpop.permute.xlu1 %535  ;;  %v570_v11 = vsel %vm557_vm1, %v819_v7, %v534_v9 }
 0x172   : > { %v571_v10 = vsel %vm557_vm1, %v817_v6, %v536_v8  ;;  %587 = vst.msk [vmem:[%s943_s4 + $0x60] sm:$0xff] %vm574_vm2, %v570_v11 }
 0x173   : > { %588 = vst.msk [vmem:[%s943_s4 + $0x68] sm:$0xff] %vm574_vm2, %v571_v10 }
 0x174   : > { %v522_v15 = vpop.permute.xlu0 %521 }
 0x175   : > { %v524_v14 = vpop.permute.xlu1 %523  ;;  %v564_v17 = vsel %vm557_vm1, %v823_v13, %v522_v15 }
 0x176   : > { %v565_v16 = vsel %vm557_vm1, %v821_v12, %v524_v14  ;;  %581 = vst.msk [vmem:[%s943_s4 + $0x30] sm:$0xff] %vm574_vm2, %v564_v17 }
 0x177   : > { %582 = vst.msk [vmem:[%s943_s4 + $0x38] sm:$0xff] %vm574_vm2, %v565_v16 }
 0x178   : > { %v538_v21 = vpop.permute.xlu0 %537 }
 0x179   : > { %v540_v20 = vpop.permute.xlu1 %539  ;;  %v572_v23 = vsel %vm557_vm1, %v827_v19, %v538_v21 }
 0x17a   : > { %v573_v22 = vsel %vm557_vm1, %v825_v18, %v540_v20  ;;  %589 = vst.msk [vmem:[%s943_s4 + $0x70] sm:$0xff] %vm574_vm2, %v572_v23 }
 0x17b   : > { %590 = vst.msk [vmem:[%s943_s4 + $0x78] sm:$0xff] %vm574_vm2, %v573_v22 }
 0x17c PF: > { %s15_s14 = sadd.s32 1, %s834_s14  }
 0x17d   : > { %p12_p4 = scmp.ge.s32.totalorder %s15_s14, 6  }
 0x17f   :  { %14 = sbr.rel (!%p12_p4) target bundleno = 3 (0x3), region = 62 }

</bundles_post_ra>
